<compile_context>
chip_gen: v7x
topology: tpu7x:2x2x1
jax: 0.10.0
libtpu: 0.0.40
codegen_flags: <defaults>
</compile_context>

<pallas_src>
import jax
import jax.numpy as jnp
from jax.experimental import pallas as pl
from jax.experimental.pallas import tpu as pltpu

LANE = 128      # lane width (last dim)
SUBLANE = 8     # sublane granularity (second-to-last dim, f32)


def _round_up(x, m):
    return (x + m - 1) // m * m


def _embed_kernel(x_ref, w1_ref, b1_ref, w2_ref, b2_ref, o_ref):
    # x_ref : (B_pad, D_in)   bf16  — one triplet branch per grid step
    # w1_ref: (D_in, H)       bf16  — resident across grid steps
    # b1_ref: (1, H)          f32
    # w2_ref: (H, E_pad)      bf16  — E padded to 128 lanes
    # b2_ref: (1, E_pad)      f32
    # o_ref : (B_pad, E_pad)  f32   — lane-dense output block
    h = jnp.dot(x_ref[...], w1_ref[...], preferred_element_type=jnp.float32)
    h = jnp.maximum(h + b1_ref[...], 0.0)              # f32 bias + ReLU on VPU
    out = jnp.dot(h.astype(w2_ref.dtype), w2_ref[...],
                  preferred_element_type=jnp.float32)  # f32 accumulate on MXU
    o_ref[...] = (out + b2_ref[...]).astype(o_ref.dtype)


def _embedding_net_pallas(x_stacked, w1, b1, w2, b2):
    """x_stacked: (G, B_pad, D_in) bf16 -> (G, B_pad, E_pad) f32."""
    g, b_pad, d_in = x_stacked.shape
    hidden = w1.shape[1]
    e_pad = w2.shape[1]
    return pl.pallas_call(
        _embed_kernel,
        out_shape=jax.ShapeDtypeStruct((g, b_pad, e_pad), jnp.float32),
        grid_spec=pl.GridSpec(
            grid=(g,),
            in_specs=[
                # Triplet axis squeezed; one branch per grid step.
                pl.BlockSpec((None, b_pad, d_in), lambda i: (i, 0, 0)),
                # Weights/biases: constant block index -> stay resident in VMEM.
                pl.BlockSpec((d_in, hidden), lambda i: (0, 0)),
                pl.BlockSpec((1, hidden), lambda i: (0, 0)),
                pl.BlockSpec((hidden, e_pad), lambda i: (0, 0)),
                pl.BlockSpec((1, e_pad), lambda i: (0, 0)),
            ],
            out_specs=pl.BlockSpec((None, b_pad, e_pad), lambda i: (i, 0, 0)),
        ),
        compiler_params=pltpu.CompilerParams(
            dimension_semantics=("parallel",),   # shards across TCs on v7x
        ),
    )(x_stacked, w1, b1, w2, b2)


class TripletNetPallas:
    """JAX/Pallas equivalent of TripletNet(embedding_net=MLP)."""

    def __init__(self, in_dim, hidden_dim, embed_dim, key):
        k1, k2, k3, k4 = jax.random.split(key, 4)
        self.embed_dim = embed_dim
        self.embed_pad = _round_up(embed_dim, LANE)

        # f32 master parameters (deterministic; module __init__ only fixes shapes).
        w1 = jax.random.normal(k1, (in_dim, hidden_dim), jnp.float32) * 0.02
        b1 = jax.random.normal(k2, (1, hidden_dim), jnp.float32) * 0.01
        w2 = jax.random.normal(k3, (hidden_dim, embed_dim), jnp.float32) * 0.02
        b2 = jax.random.normal(k4, (1, embed_dim), jnp.float32) * 0.01

        # MXU operands stored in bf16; biases stay f32.  w2/b2 padded to 128
        # lanes so the kernel's output block is lane-dense.
        self.w1 = w1.astype(jnp.bfloat16)
        self.b1 = b1
        self.w2 = (jnp.zeros((hidden_dim, self.embed_pad), jnp.bfloat16)
                   .at[:, :embed_dim].set(w2.astype(jnp.bfloat16)))
        self.b2 = (jnp.zeros((1, self.embed_pad), jnp.float32)
                   .at[:, :embed_dim].set(b2))

    def _prep(self, *xs):
        """Flatten NCHW -> (N, D), cast to bf16, pad rows, stack on axis 0."""
        n = xs[0].shape[0]
        n_pad = max(_round_up(n, SUBLANE), SUBLANE)
        flat = [jnp.pad(x.reshape(n, -1).astype(jnp.bfloat16),
                        ((0, n_pad - n), (0, 0))) for x in xs]
        return jnp.stack(flat, axis=0), n

    def get_embedding(self, x_nchw):
        xs, n = self._prep(x_nchw)
        out = _embedding_net_pallas(xs, self.w1, self.b1, self.w2, self.b2)
        return out[0, :n, :self.embed_dim]

    def __call__(self, x1, x2, x3):
        # Shared weights: triplet axis becomes the grid; weights are DMA'd once
        # and reused for all three branches.
        xs, n = self._prep(x1, x2, x3)
        out = _embedding_net_pallas(xs, self.w1, self.b1, self.w2, self.b2)
        e = self.embed_dim
        return out[0, :n, :e], out[1, :n, :e], out[2, :n, :e]


if __name__ == "__main__":
    # Small shapes consistent with an image-triplet forward pass.
    B, C, H, W = 2, 4, 16, 16          # NCHW inputs
    IN_DIM = C * H * W                  # 1024
    HIDDEN = 128
    EMBED = 32

    key = jax.random.PRNGKey(0)
    kx1, kx2, kx3, kparams = jax.random.split(key, 4)
    x1 = jax.random.normal(kx1, (B, C, H, W), jnp.float32)
    x2 = jax.random.normal(kx2, (B, C, H, W), jnp.float32)
    x3 = jax.random.normal(kx3, (B, C, H, W), jnp.float32)

    net = TripletNetPallas(IN_DIM, HIDDEN, EMBED, kparams)

    o1, o2, o3 = net(x1, x2, x3)
    jax.block_until_ready((o1, o2, o3))

    # Reference: same math as the PyTorch MLP forward, with the same bf16
    # MXU-operand casts and f32 accumulation the kernel uses.
    def ref_embed(x):
        xf = x.reshape(x.shape[0], -1).astype(jnp.bfloat16)
        h = jnp.dot(xf, net.w1, preferred_element_type=jnp.float32) + net.b1
        h = jnp.maximum(h, 0.0)
        out = jnp.dot(h.astype(jnp.bfloat16), net.w2,
                      preferred_element_type=jnp.float32) + net.b2
        return out[:, :net.embed_dim]

    r1, r2, r3 = ref_embed(x1), ref_embed(x2), ref_embed(x3)
    assert o1.shape == (B, EMBED) and o2.shape == (B, EMBED) and o3.shape == (B, EMBED)
    assert jnp.allclose(o1, r1, atol=1e-2, rtol=1e-2)
    assert jnp.allclose(o2, r2, atol=1e-2, rtol=1e-2)
    assert jnp.allclose(o3, r3, atol=1e-2, rtol=1e-2)

    # get_embedding path (single input) also works.
    e1 = net.get_embedding(x1)
    jax.block_until_ready(e1)
    assert e1.shape == (B, EMBED)
    assert jnp.allclose(e1, r1, atol=1e-2, rtol=1e-2)

    print("KERNEL_OK")
</pallas_src>

<mosaic_0001>
module attributes {stable_mosaic.version = 11 : i64} {
  func.func @_embed_kernel(%arg0: i32, %arg1: memref<1x8x1024xbf16, #tpu.memory_space<vmem>>, %arg2: memref<1024x128xbf16, #tpu.memory_space<vmem>>, %arg3: memref<1x128xf32, #tpu.memory_space<vmem>>, %arg4: memref<128x128xbf16, #tpu.memory_space<vmem>>, %arg5: memref<1x128xf32, #tpu.memory_space<vmem>>, %arg6: memref<1x8x128xf32, #tpu.memory_space<vmem>>) attributes {dimension_semantics = [#tpu.dimension_semantics<parallel>], iteration_bounds = array<i64: 3>, scalar_prefetch = 0 : i64, scratch_operands = 0 : i64, tpu.core_type = #tpu.core_type<tc>, window_params = [{transform_indices = @transform_0, window_bounds = array<i64: 1, 8, 1024>}, {pipeline_mode = #tpu.pipeline_mode<synchronous>, transform_indices = @transform_1, window_bounds = array<i64: 1024, 128>}, {pipeline_mode = #tpu.pipeline_mode<synchronous>, transform_indices = @transform_2, window_bounds = array<i64: 1, 128>}, {pipeline_mode = #tpu.pipeline_mode<synchronous>, transform_indices = @transform_3, window_bounds = array<i64: 128, 128>}, {pipeline_mode = #tpu.pipeline_mode<synchronous>, transform_indices = @transform_4, window_bounds = array<i64: 1, 128>}, {transform_indices = @transform_5, window_bounds = array<i64: 1, 8, 128>}]} {
    %c0 = arith.constant 0 : index
    %c0_0 = arith.constant 0 : index
    %c0_1 = arith.constant 0 : index
    %0 = vector.load %arg1[%c0, %c0_0, %c0_1] : memref<1x8x1024xbf16, #tpu.memory_space<vmem>>, vector<1x8x1024xbf16>
    %1 = vector.shape_cast %0 : vector<1x8x1024xbf16> to vector<8x1024xbf16>
    %c0_2 = arith.constant 0 : index
    %c0_3 = arith.constant 0 : index
    %2 = vector.load %arg2[%c0_2, %c0_3] : memref<1024x128xbf16, #tpu.memory_space<vmem>>, vector<1024x128xbf16>
    %cst = arith.constant dense<0.000000e+00> : vector<8x128xf32>
    %3 = tpu.matmul %1, %2, %cst {dimension_numbers = #tpu.dot_dimension_numbers<[1], [0], [0], [1], [0, 0, 1, 1], [], []>} : vector<8x1024xbf16>, vector<1024x128xbf16>, vector<8x128xf32> -> vector<8x128xf32>
    %c0_4 = arith.constant 0 : index
    %c0_5 = arith.constant 0 : index
    %4 = vector.load %arg3[%c0_4, %c0_5] : memref<1x128xf32, #tpu.memory_space<vmem>>, vector<1x128xf32>
    %5 = vector.broadcast %4 : vector<1x128xf32> to vector<8x128xf32>
    %6 = arith.addf %3, %5 : vector<8x128xf32>
    %cst_6 = arith.constant 0.000000e+00 : f32
    %7 = vector.broadcast %cst_6 : f32 to vector<8x128xf32>
    %8 = arith.maximumf %6, %7 : vector<8x128xf32>
    %9 = arith.truncf %8 : vector<8x128xf32> to vector<8x128xbf16>
    %c0_7 = arith.constant 0 : index
    %c0_8 = arith.constant 0 : index
    %10 = vector.load %arg4[%c0_7, %c0_8] : memref<128x128xbf16, #tpu.memory_space<vmem>>, vector<128x128xbf16>
    %cst_9 = arith.constant dense<0.000000e+00> : vector<8x128xf32>
    %11 = tpu.matmul %9, %10, %cst_9 {dimension_numbers = #tpu.dot_dimension_numbers<[1], [0], [0], [1], [0, 0, 1, 1], [], []>} : vector<8x128xbf16>, vector<128x128xbf16>, vector<8x128xf32> -> vector<8x128xf32>
    %c0_10 = arith.constant 0 : index
    %c0_11 = arith.constant 0 : index
    %12 = vector.load %arg5[%c0_10, %c0_11] : memref<1x128xf32, #tpu.memory_space<vmem>>, vector<1x128xf32>
    %13 = vector.broadcast %12 : vector<1x128xf32> to vector<8x128xf32>
    %14 = arith.addf %11, %13 : vector<8x128xf32>
    %c0_12 = arith.constant 0 : index
    %c0_13 = arith.constant 0 : index
    %c0_14 = arith.constant 0 : index
    %15 = vector.load %arg6[%c0_12, %c0_13, %c0_14] : memref<1x8x128xf32, #tpu.memory_space<vmem>>, vector<1x8x128xf32>
    %16 = vector.shape_cast %15 : vector<1x8x128xf32> to vector<8x128xf32>
    %17 = vector.shape_cast %14 : vector<8x128xf32> to vector<1x8x128xf32>
    tpu.vector_store %arg6[%c0_12, %c0_13, %c0_14], %17 {strides = array<i32>} : memref<1x8x128xf32, #tpu.memory_space<vmem>>, vector<1x8x128xf32>,
    return
  }
  func.func @transform_0(%arg0: i32) -> (i32, i32, i32) {
    %c0_i32 = arith.constant 0 : i32
    %c0_i32_0 = arith.constant 0 : i32
    %c0_i32_1 = arith.constant 0 : i32
    return %arg0, %c0_i32, %c0_i32_0 : i32, i32, i32
  }
  func.func @transform_1(%arg0: i32) -> (i32, i32) {
    %c0_i32 = arith.constant 0 : i32
    %c0_i32_0 = arith.constant 0 : i32
    %c0_i32_1 = arith.constant 0 : i32
    return %c0_i32, %c0_i32_0 : i32, i32
  }
  func.func @transform_2(%arg0: i32) -> (i32, i32) {
    %c0_i32 = arith.constant 0 : i32
    %c0_i32_0 = arith.constant 0 : i32
    %c0_i32_1 = arith.constant 0 : i32
    return %c0_i32, %c0_i32_0 : i32, i32
  }
  func.func @transform_3(%arg0: i32) -> (i32, i32) {
    %c0_i32 = arith.constant 0 : i32
    %c0_i32_0 = arith.constant 0 : i32
    %c0_i32_1 = arith.constant 0 : i32
    return %c0_i32, %c0_i32_0 : i32, i32
  }
  func.func @transform_4(%arg0: i32) -> (i32, i32) {
    %c0_i32 = arith.constant 0 : i32
    %c0_i32_0 = arith.constant 0 : i32
    %c0_i32_1 = arith.constant 0 : i32
    return %c0_i32, %c0_i32_0 : i32, i32
  }
  func.func @transform_5(%arg0: i32) -> (i32, i32, i32) {
    %c0_i32 = arith.constant 0 : i32
    %c0_i32_0 = arith.constant 0 : i32
    %c0_i32_1 = arith.constant 0 : i32
    return %arg0, %c0_i32, %c0_i32_0 : i32, i32, i32
  }
}

</mosaic_0001>

<bundles_post_ra>
// kernel: tpu_custom_call.1
= control target key start
LH: loop header
LB: loop body
LE: loop exit
PB: predicated region body
PF: predicated region fallthrough
CT: control target
= control target key end

     0   :  { %10 = vsyncpa [#allocation3], 0  ;;  %s1996_s0 = inlined_call_operand.hbm [shape: bf16[3,8,1024], index: 0, kind: input, shape index: {}]   ;;  %s1997_s1 = inlined_call_operand.hbm [shape: bf16[1024,128], index: 1, kind: input, shape index: {}]   ;;  %s1998_s2 = inlined_call_operand.vmem [shape: f32[1,128], index: 2, kind: input, shape index: {}]   ;;  %s1999_s3 = inlined_call_operand.hbm [shape: bf16[128,128], index: 3, kind: input, shape index: {}]   ;;  %s2000_s4 = inlined_call_operand.vmem [shape: f32[1,128], index: 4, kind: input, shape index: {}]   ;;  %s2001_s5 = inlined_call_operand.hbm [shape: f32[3,8,128], index: 5, kind: output, shape index: {}]  }
   0x1   :  { %12 = vsyncpa [#allocation3 + $0x1], 0 }
   0x2   :  { %13 = vsyncpa [#allocation6], 0 }
   0x3   :  { %14 = vsyncpa [#allocation4], 0 }
   0x4   :  { %16 = vsyncpa [#allocation4 + $0x1], 0  ;;  %s1763_s18 = smov 0   ;;  %s1765_s19 = smov 0  }
   0x5   :  { %s1767_s20 = smov 0   ;;  %s1769_s21 = smov 0  }
   0x6 LB: > { %s1784_s22 = sadd.s32 4294967295, %s1723_s21   ;;  %s1199_s23 = sadd.s32 4294967294, %s1723_s21   ;;  %s1723_s21 = sphi %s1769_s21, %s2020_s21   ;;  %s1719_s20 = sphi %s1767_s20, %s2019_s20   ;;  %s1715_s19 = sphi %s1765_s19, %s2018_s19   ;;  %s1711_s18 = sphi %s1763_s18, %s2017_s18  }
   0x7   : > { %p42_p0 = scmp.ne.s32.totalorder %s1715_s19, %s1711_s18  ;;  %p2002_p1 = scmp.eq.s32.totalorder %s1784_s22, 0 }
   0x8   : > { %p156_p3 = scmp.eq.s32.totalorder %s1199_s23, 2  ;;  %p1200_p5 = scmp.ge.s32.totalorder %s1723_s21, 1 }
   0x9   : > { %p1793_p4 = por %p2002_p1, %p42_p0  ;;  %p163_p7 = scmp.lt.s32.totalorder %s1723_s21, 4 }
   0xa   : > { %p1798_p6 = por %p156_p3, %p42_p0  ;;  %s1725_s27 = smov [#allocation5]  }
   0xb   : > { %s2005_s24 = scalar_select %p1793_p4, 1, 0 }
   0xc   : > { %s2006_s25 = scalar_select %p1798_p6, 1, 0 }
   0xd   : > { %p1803_p8 = pnand %p1200_p5, %p163_p7  ;;  %s175_s28 = sshll.u32 %s1725_s27, 4  ;;  %s176_s28 = int_to_ptr.vmem [resolvable:$true] %s175_s28 }
   0xe   : > { %s1726_s30 = smov [#allocation7]   ;;  %s1567_s9 = scalar_lea.hbm %s1997_s1, 8192 }
   0xf   : > { %s2007_s26 = scalar_select %p1803_p8, 1, 0 }
  0x10   : > { %p1428_p9 = pneg %p1803_p8  ;;  %s191_s6 = sshll.u32 %s1726_s30, 4  ;;  %s1815_s6 = int_to_ptr.vmem [resolvable:$true] %s191_s6 }
  0x11   : > { %p1568_p11 = scmp.ne.s32.totalorder %s1997_s1, %s1567_s9  ;;  %p1574_p3 = scmp.lt.u32.totalorder %s1567_s9, %s1997_s1 }
  0x12   : > { %p1811_p10 = pnand %p1428_p9, %p2002_p1 }
  0x14   : > { %p1569_p12 = pneg %p1811_p10 }
  0x16   : > { %p1570_p13 = pnand %p1569_p12, %p1568_p11 }
  0x18   : > { %p1571_p0 = pneg %p1570_p13 }
  0x1a   : > { %p1576_p5 = pnand %p1574_p3, %p1571_p0 }
  0x1c   : > { %1579 = shalt.err (!%p1576_p5)
}
  0x1d   : > { %s1580_s14 = scalar_lea.vmem %s176_s28, 8192  ;;  %p1588_p2 = scmp.lt.s32.totalorder %s176_s28, %s176_s28 }
  0x1e   : > { %p1581_p7 = scmp.ne.s32.totalorder %s176_s28, %s1580_s14  ;;  %p1589_p6 = scmp.lt.s32.totalorder %s1580_s14, %s1580_s14 }
  0x20   : > { %p1583_p9 = pnand %p1581_p7, %p1569_p12  ;;  %p1590_p4 = por %p1589_p6, %p1588_p2 }
  0x22   : > { %p1584_p1 = pneg %p1583_p9 }
  0x24   : > { %p1591_p8 = pnand %p1590_p4, %p1584_p1 }
  0x26   : > { %1594 = shalt.err (!%p1591_p8)
}
  0x27   : > { %s1727_s15 = smov 64   ;;  %s1728_s16 = smov 4  }
  0x28   : > { %1431 = dma.hbm_to_vmem [thread:$0]  (!%p1811_p10), %s1997_s1, 8192, %s176_s28, [#allocation6], %s1727_s15, %s1727_s15, %s1728_s16  }
  0x29   : > { %s1595_s7 = scalar_lea.hbm %s1999_s3, 1024 }
  0x2a   : > { %p1596_p11 = scmp.ne.s32.totalorder %s1999_s3, %s1595_s7  ;;  %p1602_p4 = scmp.lt.u32.totalorder %s1595_s7, %s1999_s3 }
  0x2c   : > { %p1598_p1 = pnand %p1596_p11, %p1569_p12 }
  0x2e   : > { %p1599_p2 = pneg %p1598_p1 }
  0x30   : > { %p1604_p6 = pnand %p1602_p4, %p1599_p2 }
  0x32   : > { %1607 = shalt.err (!%p1604_p6)
}
  0x33   : > { %s1608_s28 = scalar_lea.vmem %s1815_s6, 1024  ;;  %p1616_p3 = scmp.lt.s32.totalorder %s1815_s6, %s1815_s6 }
  0x34   : > { %p1609_p8 = scmp.ne.s32.totalorder %s1815_s6, %s1608_s28  ;;  %p1617_p5 = scmp.lt.s32.totalorder %s1608_s28, %s1608_s28 }
  0x36   : > { %p1611_p13 = pnand %p1609_p8, %p1569_p12  ;;  %p1618_p7 = por %p1617_p5, %p1616_p3 }
  0x38   : > { %p1612_p0 = pneg %p1611_p13 }
  0x3a   : > { %p1619_p9 = pnand %p1618_p7, %p1612_p0 }
  0x3c   : > { %1622 = shalt.err (!%p1619_p9)
}
  0x3d   : > { %1434 = dma.hbm_to_vmem [thread:$0]  (!%p1811_p10), %s1999_s3, 1024, %s1815_s6, [#allocation6], %s1727_s15, %s1727_s15, %s1728_s16  }
  0x3e   : > { %s1865_s14 = sadd.s32 1, %s1723_s21   ;;  %s29_s29 = sadd.s32 1, %s1719_s20 }
  0x3f   : > { %s26_s17 = ssub.s32 %s1723_s21, %s1865_s14  ;;  %p36_p12 = scmp.ne.s32.totalorder %s1719_s20, %s1715_s19 }
  0x40   : > { %p27_p11 = scmp.eq.s32.totalorder %s26_s17, 0  ;;  %p37_p1 = scmp.eq.s32.totalorder %s1723_s21, 0 }
  0x41   : > { %p2009_p2 = scmp.eq.s32.totalorder %s1784_s22, 2  ;;  %p1445_p6 = scmp.lt.s32.totalorder %s1723_s21, 3 }
  0x42   : > { %s1881_s27 = scalar_select %p27_p11, %s1719_s20, %s29_s29  }
  0x43   : > { %p1875_p4 = por %p2009_p2, %p36_p12  ;;  %p38_p8 = por %p37_p1, %p36_p12 }
  0x44   : > { %s208_s30 = sand.u32 1, %s1719_s20   ;;  %s1298_s6 = sshll.u32 %s1723_s21, 9 }
  0x45   : > { %s1204_s7 = sshll.u32 %s208_s30, 5  ;;  %s1888_s8 = scalar_lea.hbm %s1996_s0, %s1298_s6 }
  0x46   : > { %s212_s9 = scalar_lea.vmem [#allocation2], %s1204_s7  ;;  %p1892_p10 = pnand %p1445_p6, %p38_p8 }
  0x47   : > { %s220_s10 = sshll.u32 %s212_s9, 4  ;;  %s209_s28 = scalar_lea.sflag [#allocation3], %s208_s30  ;;  %s1890_s10 = int_to_ptr.vmem [resolvable:$true] %s220_s10 }
  0x48   : > { %s1623_s12 = scalar_lea.hbm %s1888_s8, 512  ;;  %p1625_p0 = pneg %p1892_p10 }
  0x49   : > { %p1624_p13 = scmp.ne.s32.totalorder %s1888_s8, %s1623_s12  ;;  %s1628_s17 = scalar_lea.hbm %s1996_s0, 1536 }
  0x4a   : > { %p1629_p7 = scmp.lt.u32.totalorder %s1888_s8, %s1996_s0  ;;  %p1630_p9 = scmp.lt.u32.totalorder %s1628_s17, %s1623_s12 }
  0x4b   : > { %p1626_p3 = pnand %p1625_p0, %p1624_p13  ;;  %p1632_p11 = scmp.lt.u32.totalorder %s1623_s12, %s1888_s8 }
  0x4c   : > { %p1631_p12 = por %p1630_p9, %p1629_p7 }
  0x4d   : > { %p1627_p5 = pneg %p1626_p3 }
  0x4e   : > { %p1633_p1 = por %p1632_p11, %p1631_p12 }
  0x50   : > { %p1634_p2 = pnand %p1633_p1, %p1627_p5 }
  0x52   : > { %1637 = shalt.err (!%p1634_p2)
}
  0x53   : > { %s1638_s30 = scalar_lea.vmem %s1890_s10, 512  ;;  %s1729_s15 = smov [#allocation2]  }
  0x54   : > { %p1639_p6 = scmp.ne.s32.totalorder %s1890_s10, %s1638_s30  ;;  %s1643_s16 = sshll.u32 %s1729_s15, 4  ;;  %s1644_s16 = int_to_ptr.vmem [resolvable:$false] %s1643_s16 }
  0x55   : > { %s1645_s9 = scalar_lea.vmem %s1644_s16, 1024  ;;  %p1646_p3 = scmp.lt.s32.totalorder %s1890_s10, %s1644_s16 }
  0x56   : > { %p1641_p8 = pnand %p1639_p6, %p1625_p0  ;;  %p1647_p7 = scmp.lt.s32.totalorder %s1645_s9, %s1638_s30 }
  0x58   : > { %p1642_p13 = pneg %p1641_p8  ;;  %p1648_p9 = por %p1647_p7, %p1646_p3 }
  0x5a   : > { %p1649_p12 = pnand %p1648_p9, %p1642_p13 }
  0x5c   : > { %1652 = shalt.err (!%p1649_p12)
}
  0x5d   : > { %1438 = dma.hbm_to_vmem [thread:$0]  (!%p1892_p10), %s1888_s8, 512, %s1890_s10, %s209_s28  }
  0x5e   : > { %p2012_p5 = scmp.ne.s32.totalorder %s2007_s26, 0 }
  0x5f   : > { %s1924_s12 = sand.u32 (!%p2012_p5), 1, %s1715_s19   ;;  %p2013_p0 = scmp.ne.s32.totalorder (!%p2012_p5), %s2005_s24, 0 }
  0x60   : > { %229 = sbr.rel (%p2012_p5) target bundleno = 624 (0x270), region = 40  ;;  %s1208_s13 = sshll.u32 (!%p2012_p5), %s1924_s12, 5 }
  0x61   : > { %s232_s29 = scalar_lea.sflag (!%p2012_p5), [#allocation3], %s1924_s12  ;;  %s1928_s17 = scalar_lea.vmem (!%p2012_p5), [#allocation2], %s1208_s13 }
  0x67   : > { %1698 = dma.done.wait (%p2013_p0), %s232_s29, 512  }
  0x68   : > { %1700 = vsyncadd (%p2013_p0), %s232_s29, 4294966784  ;;  %p2014_p10 = scmp.eq.s32.totalorder %s1784_s22, 0 }
  0x6a   : > { %1702 = dma.done.wait (%p2014_p10), [#allocation6], 9216   ;;  %p2015_p11 = pmov %p2014_p10 }
  0x6b   : > { %v1487_v0 = vld [vmem:[#allocation5 + $0x40] sm:$0xff]   ;;  %v1491_v4 = vld [vmem:[#allocation5 + $0x48] sm:$0xff]   ;;  %v1495_v8 = vld [vmem:[#allocation5 + $0x50] sm:$0xff]   ;;  %vm1731_vm0 = vmmov 0   ;;  %s1211_s8 = sshll.u32 %s1924_s12, 3  ;;  %s1295_s28 = sshll.u32 %s1784_s22, 7 }
  0x6c   : > { %1704 = vsyncadd (%p2015_p11), [#allocation6], 4294958080  ;;  %v1488_v1 = vld [vmem:[#allocation5 + $0xc0] sm:$0xff]   ;;  %1299 = vmatprep.subr.bf16.mxu0 %v1487_v0  ;;  %v1492_v5 = vld [vmem:[#allocation5 + $0xc8] sm:$0xff]   ;;  %s269_s7 = scalar_lea.vmem [#allocation8], %s1211_s8  ;;  %s1953_s16 = scalar_lea.hbm %s2001_s5, %s1295_s28 }
  0x6d   : > { %v1489_v2 = vld [vmem:[#allocation5] sm:$0xff]   ;;  %1321 = vmatprep.subr.bf16.mxu1 %v1488_v1  ;;  %v1493_v6 = vld [vmem:[#allocation5 + $0x8] sm:$0xff]   ;;  %v1496_v9 = vld [vmem:[#allocation5 + $0xd0] sm:$0xff]   ;;  %s1110_s6 = sshll.u32 %s269_s7, 4  ;;  %s1097_s9 = scalar_lea.sflag [#allocation4], %s1924_s12  ;;  %s1955_s6 = int_to_ptr.vmem [resolvable:$true] %s1110_s6 }
  0x6e   : > { %v1490_v3 = vld [vmem:[#allocation5 + $0x80] sm:$0xff]   ;;  %1300 = vmatpush3.bf16.msra.mxu0 %v1489_v2  ;;  %v1494_v7 = vld [vmem:[#allocation5 + $0x88] sm:$0xff]   ;;  %v1497_v10 = vld [vmem:[#allocation5 + $0x10] sm:$0xff]   ;;  %s1653_s22 = scalar_lea.vmem %s1955_s6, 128  ;;  %s1732_s13 = smov [#allocation8]  }
  0x6f   : > { %1322 = vmatpush3.bf16.msra.mxu1 %v1490_v3  ;;  %1301 = vmatprep.subr.bf16.mxu0 %v1491_v4  ;;  %v1498_v11 = vld [vmem:[#allocation5 + $0x90] sm:$0xff]   ;;  %v1499_v12 = vld [vmem:[#allocation5 + $0x58] sm:$0xff]   ;;  %v1503_v16 = vld [vmem:[#allocation5 + $0x60] sm:$0xff]   ;;  %p1654_p1 = scmp.ne.s32.totalorder %s1955_s6, %s1653_s22  ;;  %s1657_s29 = sshll.u32 %s1732_s13, 4  ;;  %s1658_s29 = int_to_ptr.vmem [resolvable:$false] %s1657_s29 }
  0x70   : > { %1323 = vmatprep.subr.bf16.mxu1 %v1492_v5  ;;  %v1500_v13 = vld [vmem:[#allocation5 + $0xd8] sm:$0xff]   ;;  %v1504_v17 = vld [vmem:[#allocation5 + $0xe0] sm:$0xff]   ;;  %v1507_v20 = vld [vmem:[#allocation5 + $0x68] sm:$0xff]   ;;  %p1660_p8 = scmp.lt.s32.totalorder %s1955_s6, %s1658_s29 }
  0x71   : > { %v1501_v14 = vld [vmem:[#allocation5 + $0x18] sm:$0xff]   ;;  %v1505_v18 = vld [vmem:[#allocation5 + $0x20] sm:$0xff]   ;;  %v1508_v21 = vld [vmem:[#allocation5 + $0xe8] sm:$0xff]   ;;  %p1655_p2 = pnand %p1654_p1, %p1875_p4 }
  0x72   : > { %1302 = vmatpush3.bf16.msra.mxu0 %v1493_v6  ;;  %v1502_v15 = vld [vmem:[#allocation5 + $0x98] sm:$0xff]   ;;  %v1506_v19 = vld [vmem:[#allocation5 + $0xa0] sm:$0xff]   ;;  %v1509_v22 = vld [vmem:[#allocation5 + $0x28] sm:$0xff]  }
  0x73   : > { %1324 = vmatpush3.bf16.msra.mxu1 %v1494_v7  ;;  %1303 = vmatprep.subr.bf16.mxu0 %v1495_v8  ;;  %v1510_v23 = vld [vmem:[#allocation5 + $0xa8] sm:$0xff]   ;;  %v1511_v24 = vld [vmem:[#allocation5 + $0x70] sm:$0xff]   ;;  %v1515_v28 = vld [vmem:[#allocation5 + $0x78] sm:$0xff]   ;;  %p1656_p6 = pneg %p1655_p2 }
  0x74   : > { %1325 = vmatprep.subr.bf16.mxu1 %v1496_v9  ;;  %v1512_v25 = vld [vmem:[#allocation5 + $0xf0] sm:$0xff]   ;;  %v1516_v29 = vld [vmem:[#allocation5 + $0xf8] sm:$0xff]   ;;  %v271_v32 = vld [vmem:[%s1928_s17] sm:$0xff] }
  0x75   : > { %v1513_v26 = vld [vmem:[#allocation5 + $0x30] sm:$0xff]   ;;  %v1517_v30 = vld [vmem:[#allocation5 + $0x38] sm:$0xff]   ;;  %v272_v33 = vld [vmem:[%s1928_s17 + $0x8] sm:$0xff]  ;;  %v1213_v34 = vcombine.low %v271_v32, %v271_v32  ;;  %v1214_v35 = vcombine.high %v271_v32, %v271_v32 }
  0x76   : > { %1304 = vmatpush3.bf16.msra.mxu0 %v1497_v10  ;;  %v1514_v27 = vld [vmem:[#allocation5 + $0xb0] sm:$0xff]   ;;  %v1518_v31 = vld [vmem:[#allocation5 + $0xb8] sm:$0xff]   ;;  %v1215_v36 = vcombine.low %v272_v33, %v272_v33  ;;  %v1216_v37 = vcombine.high %v272_v33, %v272_v33  ;;  %v1523_v38 = vld [vmem:[#allocation5 + $0x140] sm:$0xff]  }
  0x77   : > { %1326 = vmatpush3.bf16.msra.mxu1 %v1498_v11  ;;  %1305 = vmatprep.subr.bf16.mxu0 %v1499_v12  ;;  %v1524_v39 = vld [vmem:[#allocation5 + $0x1c0] sm:$0xff]   ;;  %v1527_v42 = vld [vmem:[#allocation5 + $0x148] sm:$0xff]   ;;  %v1531_v46 = vld [vmem:[#allocation5 + $0x150] sm:$0xff]  }
  0x78   : > { %1327 = vmatprep.subr.bf16.mxu1 %v1500_v13  ;;  %854 = vmatprep.mubr.bf16.mxu0 %v1214_v35  ;;  %v1525_v40 = vld [vmem:[#allocation5 + $0x100] sm:$0xff]   ;;  %v1528_v43 = vld [vmem:[#allocation5 + $0x1c8] sm:$0xff]   ;;  %v1532_v47 = vld [vmem:[#allocation5 + $0x1d0] sm:$0xff]   ;;  %v1730_v13 = vmov 0.0  }
  0x79   : > { %894 = vmatprep.mubr.bf16.mxu1 %v1216_v37  ;;  %v1526_v41 = vld [vmem:[#allocation5 + $0x180] sm:$0xff]   ;;  %v1529_v44 = vld [vmem:[#allocation5 + $0x108] sm:$0xff]   ;;  %v1533_v48 = vld [vmem:[#allocation5 + $0x110] sm:$0xff]  }
  0x7a   : > { %1306 = vmatpush3.bf16.msra.mxu0 %v1501_v14  ;;  %v1530_v45 = vld [vmem:[#allocation5 + $0x188] sm:$0xff]   ;;  %v1534_v49 = vld [vmem:[#allocation5 + $0x190] sm:$0xff]   ;;  %v1535_v50 = vld [vmem:[#allocation5 + $0x158] sm:$0xff]  }
  0x7b   : > { %1328 = vmatpush3.bf16.msra.mxu1 %v1502_v15  ;;  %1307 = vmatprep.subr.bf16.mxu0 %v1503_v16  ;;  %v1536_v51 = vld [vmem:[#allocation5 + $0x1d8] sm:$0xff]   ;;  %v1539_v54 = vld [vmem:[#allocation5 + $0x160] sm:$0xff]   ;;  %v1543_v58 = vld [vmem:[#allocation5 + $0x168] sm:$0xff]  }
  0x7c   : > { %1329 = vmatprep.subr.bf16.mxu1 %v1504_v17  ;;  %v1537_v52 = vld [vmem:[#allocation5 + $0x118] sm:$0xff]   ;;  %v1540_v55 = vld [vmem:[#allocation5 + $0x1e0] sm:$0xff]   ;;  %v1544_v59 = vld [vmem:[#allocation5 + $0x1e8] sm:$0xff]  }
  0x7d   : > { %v1538_v53 = vld [vmem:[#allocation5 + $0x198] sm:$0xff]   ;;  %v1541_v56 = vld [vmem:[#allocation5 + $0x120] sm:$0xff]   ;;  %v1545_v60 = vld [vmem:[#allocation5 + $0x128] sm:$0xff]  }
  0x7e   : > { %1308 = vmatpush3.bf16.msra.mxu0 %v1505_v18  ;;  %v1542_v57 = vld [vmem:[#allocation5 + $0x1a0] sm:$0xff]   ;;  %v1546_v61 = vld [vmem:[#allocation5 + $0x1a8] sm:$0xff]   ;;  %v1547_v62 = vld [vmem:[#allocation5 + $0x170] sm:$0xff]  }
  0x7f   : > { %1330 = vmatpush3.bf16.msra.mxu1 %v1506_v19  ;;  %1309 = vmatprep.subr.bf16.mxu0 %v1507_v20  ;;  %v1548_v63 = vld [vmem:[#allocation5 + $0x1f0] sm:$0xff]   ;;  %v1551_v2 = vld [vmem:[#allocation5 + $0x178] sm:$0xff]   ;;  %v1559_v12 = vld [vmem:[#allocation7] sm:$0xff]  }
  0x80   : > { %1331 = vmatprep.subr.bf16.mxu1 %v1508_v21  ;;  %v1549_v0 = vld [vmem:[#allocation5 + $0x130] sm:$0xff]   ;;  %v1552_v3 = vld [vmem:[#allocation5 + $0x1f8] sm:$0xff]   ;;  %v1560_v14 = vld [vmem:[#allocation7 + $0x8] sm:$0xff]  }
  0x81   : > { %v1550_v1 = vld [vmem:[#allocation5 + $0x1b0] sm:$0xff]   ;;  %v1553_v4 = vld [vmem:[#allocation5 + $0x138] sm:$0xff]   ;;  %v1563_v17 = vld [vmem:[#allocation7 + $0x20] sm:$0xff]  }
  0x82   : > { %1310 = vmatpush3.bf16.msra.mxu0 %v1509_v22  ;;  %v1554_v5 = vld [vmem:[#allocation5 + $0x1b8] sm:$0xff]   ;;  %v273_v6 = vld [vmem:[%s1928_s17 + $0x10] sm:$0xff]  ;;  %v1564_v18 = vld [vmem:[#allocation7 + $0x28] sm:$0xff]  }
  0x83   : > { %1332 = vmatpush3.bf16.msra.mxu1 %v1510_v23  ;;  %1311 = vmatprep.subr.bf16.mxu0 %v1511_v24  ;;  %v1217_v7 = vcombine.low %v273_v6, %v273_v6  ;;  %v1218_v8 = vcombine.high %v273_v6, %v273_v6  ;;  %v274_v9 = vld [vmem:[%s1928_s17 + $0x18] sm:$0xff]  ;;  %v1561_v15 = vld [vmem:[#allocation7 + $0x10] sm:$0xff]   ;;  %v1212_v23 = vld [vmem:[%s1998_s2] ss:$0 sm:$0xff]  ;;  %s1659_s17 = scalar_lea.vmem %s1658_s29, 256 }
  0x84   : > { %1333 = vmatprep.subr.bf16.mxu1 %v1512_v25  ;;  %v1219_v10 = vcombine.low %v274_v9, %v274_v9  ;;  %v1220_v11 = vcombine.high %v274_v9, %v274_v9  ;;  %v1562_v16 = vld [vmem:[#allocation7 + $0x18] sm:$0xff]   ;;  %v1565_v19 = vld [vmem:[#allocation7 + $0x30] sm:$0xff]   ;;  %p1661_p13 = scmp.lt.s32.totalorder %s1659_s17, %s1653_s22 }
  0x85   : > { %v1566_v20 = vld [vmem:[#allocation7 + $0x38] sm:$0xff]  }
  0x86   : > { %1312 = vmatpush3.bf16.msra.mxu0 %v1513_v26  ;;  %p1662_p3 = por %p1661_p13, %p1660_p8 }
  0x87   : > { %1334 = vmatpush3.bf16.msra.mxu1 %v1514_v27  ;;  %1313 = vmatprep.subr.bf16.mxu0 %v1515_v28 }
  0x88   : > { %1335 = vmatprep.subr.bf16.mxu1 %v1516_v29  ;;  %p1663_p7 = pnand %p1662_p3, %p1656_p6 }
  0x8a   : > { %1314 = vmatpush3.bf16.msra.mxu0 %v1517_v30 }
  0x8b   : > { %1336 = vmatpush3.bf16.msra.mxu1 %v1518_v31  ;;  %1343 = vmatprep.subr.bf16.mxu0 %v1523_v38 }
  0x8c   : > { %1365 = vmatprep.subr.bf16.mxu1 %v1524_v39 }
  0x8d   : > { %855 = vmatmul.mubr.bf16.vlgmr.msra.gmra.mrb[0].mxu0 %v1213_v34 }
  0x8e   : > { %895 = vmatmul.mubr.bf16.vlgmr.msra.gmra.mrb[0].mxu1 %v1215_v36  ;;  %1344 = vmatpush3.bf16.msra.mxu0 %v1525_v40 }
  0x8f   : > { %1366 = vmatpush3.bf16.msra.mxu1 %v1526_v41  ;;  %1345 = vmatprep.subr.bf16.mxu0 %v1527_v42 }
  0x90   : > { %1367 = vmatprep.subr.bf16.mxu1 %v1528_v43  ;;  %934 = vmatprep.mubr.bf16.mxu0 %v1218_v8 }
  0x91   : > { %974 = vmatprep.mubr.bf16.mxu1 %v1220_v11 }
  0x92   : > { %1346 = vmatpush3.bf16.msra.mxu0 %v1529_v44 }
  0x93   : > { %1368 = vmatpush3.bf16.msra.mxu1 %v1530_v45  ;;  %1347 = vmatprep.subr.bf16.mxu0 %v1531_v46 }
  0x94   : > { %1369 = vmatprep.subr.bf16.mxu1 %v1532_v47 }
  0x96   : > { %1348 = vmatpush3.bf16.msra.mxu0 %v1533_v48  ;;  %v1285_v48 = vld [vmem:[%s2000_s4] ss:$0 sm:$0xff] }
  0x97   : > { %1370 = vmatpush3.bf16.msra.mxu1 %v1534_v49  ;;  %1349 = vmatprep.subr.bf16.mxu0 %v1535_v50 }
  0x98   : > { %1371 = vmatprep.subr.bf16.mxu1 %v1536_v51 }
  0x9a   : > { %1350 = vmatpush3.bf16.msra.mxu0 %v1537_v52 }
  0x9b   : > { %1372 = vmatpush3.bf16.msra.mxu1 %v1538_v53  ;;  %1351 = vmatprep.subr.bf16.mxu0 %v1539_v54 }
  0x9c   : > { %1373 = vmatprep.subr.bf16.mxu1 %v1540_v55 }
  0x9e   : > { %1352 = vmatpush3.bf16.msra.mxu0 %v1541_v56 }
  0x9f   : > { %1374 = vmatpush3.bf16.msra.mxu1 %v1542_v57  ;;  %1353 = vmatprep.subr.bf16.mxu0 %v1543_v58 }
  0xa0   : > { %1375 = vmatprep.subr.bf16.mxu1 %v1544_v59 }
  0xa2   : > { %1354 = vmatpush3.bf16.msra.mxu0 %v1545_v60 }
  0xa3   : > { %1376 = vmatpush3.bf16.msra.mxu1 %v1546_v61  ;;  %1355 = vmatprep.subr.bf16.mxu0 %v1547_v62 }
  0xa4   : > { %1377 = vmatprep.subr.bf16.mxu1 %v1548_v63 }
  0xa6   : > { %1356 = vmatpush3.bf16.msra.mxu0 %v1549_v0 }
  0xa7   : > { %1378 = vmatpush3.bf16.msra.mxu1 %v1550_v1  ;;  %1357 = vmatprep.subr.bf16.mxu0 %v1551_v2 }
  0xa8   : > { %1379 = vmatprep.subr.bf16.mxu1 %v1552_v3 }
  0xaa   : > { %1358 = vmatpush3.bf16.msra.mxu0 %v1553_v4 }
  0xab   : > { %1380 = vmatpush3.bf16.msra.mxu1 %v1554_v5  ;;  %1396 = vmatprep.subr.bf16.mxu0 %v1730_v13 }
  0xad   : > { %935 = vmatmul.mubr.bf16.vlgmr.msra.gmra.mrb[4].mxu0 %v1217_v7 }
  0xae   : > { %975 = vmatmul.mubr.bf16.vlgmr.msra.gmra.mrb[4].mxu1 %v1219_v10  ;;  %1397 = vmatpush3.bf16.msra.mxu0 %v1559_v12 }
  0xaf   : > { %1398 = vmatprep.subr.bf16.mxu0 %v1730_v13  ;;  %1412 = vmatprep.mubr.msk.bf16.mxu0 %vm1731_vm0, %v1730_v13 }
  0xb2   : > { %1399 = vmatpush3.bf16.msra.mxu0 %v1560_v14 }
  0xb3   : > { %1400 = vmatprep.subr.bf16.mxu0 %v1730_v13 }
  0xb6   : > { %1401 = vmatpush3.bf16.msra.mxu0 %v1561_v15 }
  0xb7   : > { %1402 = vmatprep.subr.bf16.mxu0 %v1730_v13 }
  0xba   : > { %1403 = vmatpush3.bf16.msra.mxu0 %v1562_v16 }
  0xbb   : > { %1404 = vmatprep.subr.bf16.mxu0 %v1730_v13 }
  0xbe   : > { %1405 = vmatpush3.bf16.msra.mxu0 %v1563_v17 }
  0xbf   : > { %1406 = vmatprep.subr.bf16.mxu0 %v1730_v13 }
  0xc2   : > { %1407 = vmatpush3.bf16.msra.mxu0 %v1564_v18 }
  0xc3   : > { %1408 = vmatprep.subr.bf16.mxu0 %v1730_v13 }
  0xc6   : > { %1409 = vmatpush3.bf16.msra.mxu0 %v1565_v19 }
  0xc7   : > { %1410 = vmatprep.subr.bf16.mxu0 %v1730_v13 }
  0xca   : > { %1411 = vmatpush3.bf16.msra.mxu0 %v1566_v20 }
 0x160   : > { %v1315_v21 = vpop.f32.mrb[0].mxu0 }
 0x161   : > { %v1337_v22 = vpop.f32.mrb[0].mxu1  ;;  %v1316_v24 = vpop.f32.mrb[1].mxu0 }
 0x162   : > { %v1338_v25 = vpop.f32.mrb[1].mxu1  ;;  %v1317_v26 = vadd.f32 %v1316_v24, %v1315_v21  ;;  %v1318_v28 = vpop.f32.mrb[2].mxu0 }
 0x163   : > { %v1339_v27 = vadd.f32 %v1338_v25, %v1337_v22  ;;  %v1340_v29 = vpop.f32.mrb[2].mxu1  ;;  %v1319_v30 = vpop.f32.mrb[3].mxu0 }
 0x164   : > { %v1341_v31 = vpop.f32.mrb[3].mxu1  ;;  %v857_v32 = vadd.f32 %v1317_v26, %v1212_v23 }
 0x166   : > { %v897_v33 = vadd.f32 %v1339_v27, %v857_v32 }
 0x180   : > { %v1359_v34 = vpop.f32.mrb[4].mxu0 }
 0x181   : > { %v1381_v35 = vpop.f32.mrb[4].mxu1  ;;  %v1360_v36 = vpop.f32.mrb[5].mxu0 }
 0x182   : > { %v1382_v37 = vpop.f32.mrb[5].mxu1  ;;  %v1361_v38 = vadd.f32 %v1360_v36, %v1359_v34  ;;  %v1362_v40 = vpop.f32.mrb[6].mxu0 }
 0x183   : > { %v1383_v39 = vadd.f32 %v1382_v37, %v1381_v35  ;;  %v1384_v41 = vpop.f32.mrb[6].mxu1  ;;  %v1363_v42 = vpop.f32.mrb[7].mxu0 }
 0x184   : > { %v1385_v43 = vpop.f32.mrb[7].mxu1  ;;  %v937_v44 = vadd.f32 %v1361_v38, %v897_v33 }
 0x186   : > { %v977_v45 = vadd.f32 %v1383_v39, %v937_v44 }
 0x188   : > { %v982_v46 = vmax.f32 %v977_v45, 0.0 }
 0x18a   : > { %v983_v47 = vpack.c.bf16 %v982_v46, %v982_v46 }
 0x18c   : > { %1413 = vmatmul.mubr.bf16.vlgmr.msra.gmra.mrb[8].mxu0 %v983_v47 }
 0x25f   : > { %v1089_v49 = vpop.f32.mrb[8].mxu0 }
 0x260   : > { %v1090_v50 = vadd.f32 %v1285_v48, %v1089_v49  ;;  %v1414_v51 = vpop.f32.mrb[9].mxu0 }
 0x261   : > { %v1092_v52 = vpop.f32.mrb[10].mxu0 }
 0x262   : > { %1095 = vst [vmem:[%s269_s7] sm:$0xff] %v1090_v50  ;;  %v1415_v53 = vpop.f32.mrb[11].mxu0 }
 0x263   : > { %1666 = shalt.err (!%p1663_p7)
}
 0x264   : > { %s1667_s12 = scalar_lea.hbm %s1953_s16, 128  ;;  %s1671_s8 = scalar_lea.hbm %s2001_s5, 384 }
 0x265   : > { %p1668_p9 = scmp.ne.s32.totalorder %s1953_s16, %s1667_s12  ;;  %p1672_p0 = scmp.lt.u32.totalorder %s1953_s16, %s2001_s5 }
 0x266   : > { %p1673_p10 = scmp.lt.u32.totalorder %s1671_s8, %s1667_s12  ;;  %p1675_p1 = scmp.lt.u32.totalorder %s1667_s12, %s1953_s16 }
 0x267   : > { %p1669_p12 = pnand %p1668_p9, %p1875_p4 }
 0x268   : > { %p1674_p11 = por %p1673_p10, %p1672_p0 }
 0x269   : > { %p1670_p5 = pneg %p1669_p12 }
 0x26a   : > { %p1676_p2 = por %p1675_p1, %p1674_p11 }
 0x26c   : > { %p1677_p6 = pnand %p1676_p2, %p1670_p5 }
 0x26e   : > { %1680 = shalt.err (!%p1677_p6)
}
 0x26f   : > { %1426 = dma.vmem_to_hbm [thread:$0]  (%p1875_p4), %s1955_s6, 128, %s1953_s16, %s1097_s9  }
 0x270 PF: > { %p1448_p8 = scmp.ge.s32.totalorder %s1723_s21, 2  ;;  %s1122_s28 = sand.u32 1, %s1711_s18  }
 0x271   : > { %p2016_p13 = scmp.ne.s32.totalorder %s2006_s25, 0  ;;  %s1123_s7 = scalar_lea.sflag [#allocation4], %s1122_s28 }
 0x273   : > { %p1440_p3 = pnand %p1448_p8, %p2016_p13 }
 0x275   : > { %1706 = dma.done.wait (!%p1440_p3), %s1123_s7, 128  }
 0x276   : > { %1708 = vsyncadd (!%p1440_p3), %s1123_s7, 4294967168  ;;  %p19_p7 = scmp.ge.s32.totalorder %s1865_s14, 5   ;;  %s2017_s18 = smov %s1715_s19 }
 0x277   : > { %s2018_s19 = smov %s1719_s20  ;;  %s2019_s20 = smov %s1881_s27 }
 0x278   : > { %s2020_s21 = smov %s1865_s14  ;;  %21 = sbr.rel (!%p19_p7) target bundleno = 6 (0x6), region = 93 }
 0x27f   :  { %1128 = vsyncpa [#allocation3], 1 }
 0x280   :  { %1130 = vsyncpa [#allocation3 + $0x1], 1 }
 0x281   :  { %1131 = vsyncpa [#allocation6], 1 }
 0x282   :  { %1132 = vsyncpa [#allocation4], 1 }
 0x283   :  { %1134 = vsyncpa [#allocation4 + $0x1], 1 }

</bundles_post_ra>
